<compile_context>
chip_gen: v6e
topology: v6e:2x2x1
jax: 0.10.0
libtpu: 0.0.40
codegen_flags: <defaults>
</compile_context>

<pallas_src>
import jax
import jax.numpy as jnp
from jax.experimental import pallas as pl
from jax.experimental.pallas import tpu as pltpu

PACK = 8  # batch rows folded into the lane dim; 8 * D_out(16) = 128 lanes (fully dense).


def mlp_kernel(x_ref, w1_ref, b1_ref, w2_ref, b2_ref, o_ref):
    # Layer 1: Linear + ReLU (MXU matmul + VPU bias/ReLU) on packed rows.
    h = jnp.dot(x_ref[...], w1_ref[...], preferred_element_type=jnp.float32)
    h = jnp.maximum(h + b1_ref[...], 0.0)            # (TB, 8*D_in) + (1, 8*D_in)
    # Layer 2: Linear + Sigmoid.
    z = jnp.dot(h, w2_ref[...], preferred_element_type=jnp.float32)
    z = z + b2_ref[...]                               # (TB, 8*D_out) + (1, 8*D_out)
    # sigmoid(z) == 0.5 * (tanh(z/2) + 1): EUP tanh, matches jax.nn.sigmoid to ~1e-7.
    o_ref[...] = (0.5 * (jnp.tanh(0.5 * z) + 1.0)).astype(o_ref.dtype)


def neural_network_forward(x, w1, b1, w2, b2, *, block_b=8192):
    """x: (B, D_in) f32; w1: (D_in, D_in); b1: (D_in,); w2: (D_in, D_out); b2: (D_out,)."""
    B, D_in = x.shape
    D_out = w2.shape[1]

    # ---- lane-dense row packing (free reshapes; same HBM bytes) -------------
    rem = (-B) % PACK
    if rem:  # tiny (< PACK rows) tail pad, only when B isn't a multiple of PACK
        x = jnp.pad(x, ((0, rem), (0, 0)))
    Bp = B + rem
    n_rows = Bp // PACK                      # packed rows
    PD_in, PD_out = PACK * D_in, PACK * D_out

    x_p = x.reshape(n_rows, PD_in)           # row-major reshape: no data movement
    eye = jnp.eye(PACK, dtype=w1.dtype)
    w1_p = jnp.kron(eye, w1)                 # (PD_in, PD_in) block-diagonal
    w2_p = jnp.kron(eye, w2)                 # (PD_in, PD_out) block-diagonal
    b1_p = jnp.tile(b1, PACK).reshape(1, PD_in)
    b2_p = jnp.tile(b2, PACK).reshape(1, PD_out)

    # ---- batch tiling: big tiles, but >= 2 grid steps when possible (v7x) ---
    cap = max(8, (block_b // PACK) // 8 * 8)             # tile cap in packed rows
    if n_rows <= 8:
        tbp = n_rows                                     # single full block
    else:
        half = ((pl.cdiv(n_rows, 2) + 7) // 8) * 8       # >= 2 steps for v7x's 2 TCs
        tbp = max(8, min(cap, half))
    grid = (pl.cdiv(n_rows, tbp),)                       # partial last block is masked

    cost = pl.CostEstimate(
        flops=2 * n_rows * PD_in * (PD_in + PD_out),
        transcendentals=n_rows * PD_out,
        bytes_accessed=4 * (n_rows * (PD_in + PD_out)            # x read + out write
                            + PD_in * (PD_in + PD_out)           # resident weights
                            + PD_in + PD_out),                   # biases
    )

    out_p = pl.pallas_call(
        mlp_kernel,
        out_shape=jax.ShapeDtypeStruct((n_rows, PD_out), jnp.float32),
        grid_spec=pl.GridSpec(
            grid=grid,
            in_specs=[
                # x: streamed over the batch grid axis (double-buffered by the pipeline).
                pl.BlockSpec((tbp, PD_in), lambda i: (i, 0)),
                # Weights / biases: constant block index -> fetched once, VMEM-resident.
                pl.BlockSpec((PD_in, PD_in), lambda i: (0, 0)),
                pl.BlockSpec((1, PD_in), lambda i: (0, 0)),
                pl.BlockSpec((PD_in, PD_out), lambda i: (0, 0)),
                pl.BlockSpec((1, PD_out), lambda i: (0, 0)),
            ],
            out_specs=pl.BlockSpec((tbp, PD_out), lambda i: (i, 0)),
        ),
        compiler_params=pltpu.CompilerParams(
            # Independent batch tiles: let v7x shard the grid across its 2 TensorCores.
            dimension_semantics=("parallel",),
            # >= scoped default everywhere, <= physical VMEM everywhere (v7x: 64 MiB).
            vmem_limit_bytes=32 * 1024 * 1024,
        ),
        cost_estimate=cost,
    )(x_p, w1_p, b1_p, w2_p, b2_p)

    out = out_p.reshape(Bp, D_out)           # free reshape back to per-row layout
    return out[:B] if rem else out


def reference_forward(x, w1, b1, w2, b2):
    h = jnp.maximum(x @ w1 + b1, 0.0)
    return jax.nn.sigmoid(h @ w2 + b2)


if __name__ == "__main__":
    # Small shapes consistent with the module's forward.
    B, D_in, D_out = 8, 32, 16

    key = jax.random.PRNGKey(0)
    kx, kw1, kb1, kw2, kb2 = jax.random.split(key, 5)

    x = jax.random.normal(kx, (B, D_in), dtype=jnp.float32)

    # Deterministic param init mimicking nn.Linear default (uniform in +/- 1/sqrt(fan_in)).
    bound = 1.0 / (D_in ** 0.5)
    w1 = jax.random.uniform(kw1, (D_in, D_in), minval=-bound, maxval=bound, dtype=jnp.float32)
    b1 = jax.random.uniform(kb1, (D_in,), minval=-bound, maxval=bound, dtype=jnp.float32)
    w2 = jax.random.uniform(kw2, (D_in, D_out), minval=-bound, maxval=bound, dtype=jnp.float32)
    b2 = jax.random.uniform(kb2, (D_out,), minval=-bound, maxval=bound, dtype=jnp.float32)

    out = jax.block_until_ready(neural_network_forward(x, w1, b1, w2, b2))

    ref = reference_forward(x, w1, b1, w2, b2)
    assert out.shape == (B, D_out)
    assert jnp.allclose(out, ref, atol=1e-5, rtol=1e-5), "Pallas output mismatch vs reference"

    print("KERNEL_OK")
</pallas_src>

<mosaic_0001>
module attributes {stable_mosaic.version = 11 : i64} {
  func.func @mlp_kernel(%arg0: i32, %arg1: memref<1x256xf32, #tpu.memory_space<vmem>>, %arg2: memref<256x256xf32, #tpu.memory_space<vmem>>, %arg3: memref<1x256xf32, #tpu.memory_space<vmem>>, %arg4: memref<256x128xf32, #tpu.memory_space<vmem>>, %arg5: memref<1x128xf32, #tpu.memory_space<vmem>>, %arg6: memref<1x128xf32, #tpu.memory_space<vmem>>) attributes {dimension_semantics = [#tpu.dimension_semantics<parallel>], iteration_bounds = array<i64: 1>, scalar_prefetch = 0 : i64, scratch_operands = 0 : i64, tpu.core_type = #tpu.core_type<tc>, window_params = [{transform_indices = @transform_0, window_bounds = array<i64: 1, 256>}, {pipeline_mode = #tpu.pipeline_mode<synchronous>, transform_indices = @transform_1, window_bounds = array<i64: 256, 256>}, {pipeline_mode = #tpu.pipeline_mode<synchronous>, transform_indices = @transform_2, window_bounds = array<i64: 1, 256>}, {pipeline_mode = #tpu.pipeline_mode<synchronous>, transform_indices = @transform_3, window_bounds = array<i64: 256, 128>}, {pipeline_mode = #tpu.pipeline_mode<synchronous>, transform_indices = @transform_4, window_bounds = array<i64: 1, 128>}, {transform_indices = @transform_5, window_bounds = array<i64: 1, 128>}]} {
    %c0 = arith.constant 0 : index
    %c0_0 = arith.constant 0 : index
    %0 = vector.load %arg1[%c0, %c0_0] : memref<1x256xf32, #tpu.memory_space<vmem>>, vector<1x256xf32>
    %c0_1 = arith.constant 0 : index
    %c0_2 = arith.constant 0 : index
    %1 = vector.load %arg2[%c0_1, %c0_2] : memref<256x256xf32, #tpu.memory_space<vmem>>, vector<256x256xf32>
    %cst = arith.constant dense<0.000000e+00> : vector<1x256xf32>
    %2 = tpu.matmul %0, %1, %cst {dimension_numbers = #tpu.dot_dimension_numbers<[1], [0], [0], [1], [0, 0, 1, 1], [], []>} : vector<1x256xf32>, vector<256x256xf32>, vector<1x256xf32> -> vector<1x256xf32>
    %c0_3 = arith.constant 0 : index
    %c0_4 = arith.constant 0 : index
    %3 = vector.load %arg3[%c0_3, %c0_4] : memref<1x256xf32, #tpu.memory_space<vmem>>, vector<1x256xf32>
    %4 = arith.addf %2, %3 : vector<1x256xf32>
    %cst_5 = arith.constant 0.000000e+00 : f32
    %5 = vector.broadcast %cst_5 : f32 to vector<1x256xf32>
    %6 = arith.maximumf %4, %5 : vector<1x256xf32>
    %c0_6 = arith.constant 0 : index
    %c0_7 = arith.constant 0 : index
    %7 = vector.load %arg4[%c0_6, %c0_7] : memref<256x128xf32, #tpu.memory_space<vmem>>, vector<256x128xf32>
    %cst_8 = arith.constant dense<0.000000e+00> : vector<1x128xf32>
    %8 = tpu.matmul %6, %7, %cst_8 {dimension_numbers = #tpu.dot_dimension_numbers<[1], [0], [0], [1], [0, 0, 1, 1], [], []>} : vector<1x256xf32>, vector<256x128xf32>, vector<1x128xf32> -> vector<1x128xf32>
    %c0_9 = arith.constant 0 : index
    %c0_10 = arith.constant 0 : index
    %9 = vector.load %arg5[%c0_9, %c0_10] : memref<1x128xf32, #tpu.memory_space<vmem>>, vector<1x128xf32>
    %10 = arith.addf %8, %9 : vector<1x128xf32>
    %cst_11 = arith.constant 5.000000e-01 : f32
    %11 = vector.broadcast %cst_11 : f32 to vector<1x128xf32>
    %12 = arith.mulf %11, %10 : vector<1x128xf32>
    %13 = math.tanh %12 : vector<1x128xf32>
    %cst_12 = arith.constant 1.000000e+00 : f32
    %14 = vector.broadcast %cst_12 : f32 to vector<1x128xf32>
    %15 = arith.addf %13, %14 : vector<1x128xf32>
    %cst_13 = arith.constant 5.000000e-01 : f32
    %16 = vector.broadcast %cst_13 : f32 to vector<1x128xf32>
    %17 = arith.mulf %16, %15 : vector<1x128xf32>
    %c0_14 = arith.constant 0 : index
    %c0_15 = arith.constant 0 : index
    %18 = vector.load %arg6[%c0_14, %c0_15] : memref<1x128xf32, #tpu.memory_space<vmem>>, vector<1x128xf32>
    tpu.vector_store %arg6[%c0_14, %c0_15], %17 {strides = array<i32>} : memref<1x128xf32, #tpu.memory_space<vmem>>, vector<1x128xf32>,
    return
  }
  func.func @transform_0(%arg0: i32) -> (i32, i32) {
    %c0_i32 = arith.constant 0 : i32
    %c0_i32_0 = arith.constant 0 : i32
    return %arg0, %c0_i32 : i32, i32
  }
  func.func @transform_1(%arg0: i32) -> (i32, i32) {
    %c0_i32 = arith.constant 0 : i32
    %c0_i32_0 = arith.constant 0 : i32
    %c0_i32_1 = arith.constant 0 : i32
    return %c0_i32, %c0_i32_0 : i32, i32
  }
  func.func @transform_2(%arg0: i32) -> (i32, i32) {
    %c0_i32 = arith.constant 0 : i32
    %c0_i32_0 = arith.constant 0 : i32
    %c0_i32_1 = arith.constant 0 : i32
    return %c0_i32, %c0_i32_0 : i32, i32
  }
  func.func @transform_3(%arg0: i32) -> (i32, i32) {
    %c0_i32 = arith.constant 0 : i32
    %c0_i32_0 = arith.constant 0 : i32
    %c0_i32_1 = arith.constant 0 : i32
    return %c0_i32, %c0_i32_0 : i32, i32
  }
  func.func @transform_4(%arg0: i32) -> (i32, i32) {
    %c0_i32 = arith.constant 0 : i32
    %c0_i32_0 = arith.constant 0 : i32
    %c0_i32_1 = arith.constant 0 : i32
    return %c0_i32, %c0_i32_0 : i32, i32
  }
  func.func @transform_5(%arg0: i32) -> (i32, i32) {
    %c0_i32 = arith.constant 0 : i32
    %c0_i32_0 = arith.constant 0 : i32
    return %arg0, %c0_i32 : i32, i32
  }
}

</mosaic_0001>

<bundles_post_ra>
// kernel: tpu_custom_call.1
= control target key start
LH: loop header
LB: loop body
LE: loop exit
PB: predicated region body
PF: predicated region fallthrough
CT: control target
= control target key end

     0   :  { %10 = vsyncpa [#allocation3], 0  ;;  %s544_s0 = inlined_call_operand.hbm [shape: f32[1,256], index: 0, kind: input, shape index: {}]   ;;  %s545_s1 = inlined_call_operand.hbm [shape: f32[256,256], index: 1, kind: input, shape index: {}]   ;;  %s546_s2 = inlined_call_operand.vmem [shape: f32[1,256], index: 2, kind: input, shape index: {}]   ;;  %s547_s3 = inlined_call_operand.hbm [shape: f32[256,128], index: 3, kind: input, shape index: {}]   ;;  %s548_s4 = inlined_call_operand.vmem [shape: f32[1,128], index: 4, kind: input, shape index: {}]   ;;  %s549_s5 = inlined_call_operand.hbm [shape: f32[1,128], index: 5, kind: output, shape index: {}]  }
   0x1   :  { %11 = vsyncpa [#allocation6], 0 }
   0x2   :  { %12 = vsyncpa [#allocation4], 0  ;;  %s476_s18 = smov [#allocation5]  }
   0x3   :  { %s28_s19 = sshll.u32 %s476_s18, 4  ;;  %s29_s19 = int_to_ptr.vmem [resolvable:$true] %s28_s19 }
   0x4   :  { %s398_s20 = scalar_lea.vmem %s29_s19, 8192  ;;  %p403_p1 = scmp.lt.s32.totalorder %s29_s19, %s29_s19 }
   0x5   :  { %p399_p0 = scmp.ne.s32.totalorder %s29_s19, %s398_s20  ;;  %p404_p2 = scmp.lt.s32.totalorder %s398_s20, %s398_s20 }
   0x7   :  { %p405_p3 = por %p404_p2, %p403_p1 }
   0x9   :  { %p406_p4 = pnand %p405_p3, %p399_p0 }
   0xb   :  { %409 = shalt.err (!%p406_p4)
}
   0xc   :  { %s477_s21 = smov 256   ;;  %s478_s22 = smov 16  }
   0xd   :  { %34 = dma.hbm_to_vmem [thread:$0]  %s545_s1, 8192, %s29_s19, [#allocation6], %s477_s21, %s477_s21, %s478_s22  }
   0xe   :  { %s479_s25 = smov [#allocation2]   ;;  %s480_s27 = smov [#allocation7]  }
   0xf   :  { %s19_s26 = sshll.u32 %s479_s25, 4  ;;  %s42_s28 = sshll.u32 %s480_s27, 4  ;;  %s20_s26 = int_to_ptr.vmem [resolvable:$true] %s19_s26  ;;  %s43_s28 = int_to_ptr.vmem [resolvable:$true] %s42_s28 }
  0x10   :  { %s418_s29 = scalar_lea.vmem %s20_s26, 32  ;;  %p423_p6 = scmp.lt.s32.totalorder %s20_s26, %s20_s26 }
  0x11   :  { %p419_p5 = scmp.ne.s32.totalorder %s20_s26, %s418_s29  ;;  %p424_p7 = scmp.lt.s32.totalorder %s418_s29, %s418_s29 }
  0x13   :  { %p425_p8 = por %p424_p7, %p423_p6 }
  0x15   :  { %p426_p9 = pnand %p425_p8, %p419_p5 }
  0x17   :  { %429 = shalt.err (!%p426_p9)
}
  0x18   :  { %22 = dma.hbm_to_vmem [thread:$0]  %s544_s0, 32, %s20_s26, [#allocation3]  }
  0x19   :  { %s438_s7 = scalar_lea.vmem %s43_s28, 4096  ;;  %p443_p11 = scmp.lt.s32.totalorder %s43_s28, %s43_s28 }
  0x1a   :  { %p439_p10 = scmp.ne.s32.totalorder %s43_s28, %s438_s7  ;;  %p444_p12 = scmp.lt.s32.totalorder %s438_s7, %s438_s7 }
  0x1c   :  { %p445_p13 = por %p444_p12, %p443_p11 }
  0x1e   :  { %p446_p0 = pnand %p445_p13, %p439_p10 }
  0x20   :  { %449 = shalt.err (!%p446_p0)
}
  0x21   :  { %s481_s1 = smov 128   ;;  %s482_s8 = smov 8  }
  0x22   :  { %48 = dma.hbm_to_vmem [thread:$0]  %s547_s3, 4096, %s43_s28, [#allocation6], %s481_s1, %s481_s1, %s482_s8  }
  0x23   :  { %470 = dma.done.wait [#allocation3], 32  }
  0x24   :  { %471 = vsyncadd [#allocation3], 4294967264 }
  0x25   :  { %472 = dma.done.wait [#allocation6], 12288  }
  0x26   :  { %473 = vsyncadd [#allocation6], 4294955008  ;;  %v92_v0 = vld [vmem:[#allocation5 + $0xf8] sm:$0xff]  ;;  %v91_v1 = vld [vmem:[#allocation5 + $0xf0] sm:$0xff]  ;;  %v127_v13 = vlaneseq }
  0x27   :  { %v90_v2 = vld [vmem:[#allocation5 + $0xe8] sm:$0xff]  ;;  %148 = vmatprep.subr.mxu0 %v92_v0  ;;  %v89_v3 = vld [vmem:[#allocation5 + $0xe0] sm:$0xff]  ;;  %v88_v4 = vld [vmem:[#allocation5 + $0xd8] sm:$0xff] }
  0x28   :  { %149 = vmatpush1.msra.mxu0 %v91_v1  ;;  %v87_v5 = vld [vmem:[#allocation5 + $0xd0] sm:$0xff]  ;;  %v86_v6 = vld [vmem:[#allocation5 + $0xc8] sm:$0xff]  ;;  %v85_v7 = vld [vmem:[#allocation5 + $0xc0] sm:$0xff]  ;;  %v523_v18 = vshrl.u32 %v127_v13, 7 }
  0x29   :  { %150 = vmatprep.subr.mxu0 %v90_v2  ;;  %v84_v8 = vld [vmem:[#allocation5 + $0xb8] sm:$0xff]  ;;  %v83_v9 = vld [vmem:[#allocation5 + $0xb0] sm:$0xff]  ;;  %v82_v10 = vld [vmem:[#allocation5 + $0xa8] sm:$0xff] }
  0x2a   :  { %151 = vmatpush1.msra.mxu0 %v89_v3  ;;  %v81_v11 = vld [vmem:[#allocation5 + $0xa0] sm:$0xff]  ;;  %v80_v12 = vld [vmem:[#allocation5 + $0x98] sm:$0xff]  ;;  %v79_v14 = vld [vmem:[#allocation5 + $0x90] sm:$0xff]  ;;  %v133_v23 = vsub.s32 1, %v523_v18 }
  0x2b   :  { %152 = vmatprep.subr.mxu0 %v88_v4  ;;  %v78_v15 = vld [vmem:[#allocation5 + $0x88] sm:$0xff]  ;;  %v77_v16 = vld [vmem:[#allocation5 + $0x80] sm:$0xff]  ;;  %v76_v17 = vld [vmem:[#allocation5 + $0x78] sm:$0xff] }
  0x2c   :  { %153 = vmatpush1.msra.mxu0 %v87_v5  ;;  %v75_v19 = vld [vmem:[#allocation5 + $0x70] sm:$0xff]  ;;  %v74_v20 = vld [vmem:[#allocation5 + $0x68] sm:$0xff]  ;;  %v73_v21 = vld [vmem:[#allocation5 + $0x60] sm:$0xff] }
  0x2d   :  { %154 = vmatprep.subr.mxu0 %v86_v6  ;;  %v72_v22 = vld [vmem:[#allocation5 + $0x58] sm:$0xff]  ;;  %v71_v24 = vld [vmem:[#allocation5 + $0x50] sm:$0xff]  ;;  %v70_v25 = vld [vmem:[#allocation5 + $0x48] sm:$0xff] }
  0x2e   :  { %155 = vmatpush1.msra.mxu0 %v85_v7  ;;  %v69_v26 = vld [vmem:[#allocation5 + $0x40] sm:$0xff]  ;;  %v526_v27 = vld [vmem:[#allocation2] sm:$0x3]  ;;  %v251_v32 = vld [vmem:[#allocation7 + $0xf0] sm:$0xff] }
  0x2f   :  { %156 = vmatprep.subr.mxu0 %v84_v8  ;;  %v252_v28 = vld [vmem:[#allocation7 + $0xf8] sm:$0xff]  ;;  %v134_v30 = vrot.slane %v526_v27, %v133_v23  ;;  %v67_v33 = vld [vmem:[#allocation5 + $0x30] sm:$0xff]  ;;  %v66_v35 = vld [vmem:[#allocation5 + $0x28] sm:$0xff] }
  0x30   :  { %157 = vmatpush1.msra.mxu0 %v83_v9  ;;  %v68_v29 = vld [vmem:[#allocation5 + $0x38] sm:$0xff]  ;;  %345 = vmatprep.subr.mxu1 %v252_v28  ;;  %v235_v34 = vld [vmem:[#allocation7 + $0x70] sm:$0xff]  ;;  %v250_v36 = vld [vmem:[#allocation7 + $0xe8] sm:$0xff]  ;;  %v129_v28 = vsub.s32 0, %v523_v18 }
  0x31   :  { %158 = vmatprep.subr.mxu0 %v82_v10  ;;  %v236_v31 = vld [vmem:[#allocation7 + $0x78] sm:$0xff]  ;;  %212 = vmatprep.mubr.f32.mxu0 %v134_v30  ;;  %v65_v37 = vld [vmem:[#allocation5 + $0x20] sm:$0xff]  ;;  %v234_v38 = vld [vmem:[#allocation7 + $0x68] sm:$0xff] }
  0x32   :  { %159 = vmatpush1.msra.mxu0 %v81_v11  ;;  %346 = vmatpush3.msra.mxu1 %v236_v31  ;;  %v64_v39 = vld [vmem:[#allocation5 + $0x18] sm:$0xff]  ;;  %v249_v40 = vld [vmem:[#allocation7 + $0xe0] sm:$0xff]  ;;  %v63_v41 = vld [vmem:[#allocation5 + $0x10] sm:$0xff] }
  0x33   :  { %160 = vmatprep.subr.mxu0 %v80_v12  ;;  %347 = vmatprep.subr.mxu1 %v251_v32  ;;  %v233_v42 = vld [vmem:[#allocation7 + $0x60] sm:$0xff]  ;;  %v62_v43 = vld [vmem:[#allocation5 + $0x8] sm:$0xff]  ;;  %v248_v44 = vld [vmem:[#allocation7 + $0xd8] sm:$0xff] }
  0x34   :  { %161 = vmatpush1.msra.mxu0 %v79_v14  ;;  %348 = vmatpush3.msra.mxu1 %v235_v34  ;;  %v61_v45 = vld [vmem:[#allocation5] sm:$0xff]  ;;  %v232_v46 = vld [vmem:[#allocation7 + $0x58] sm:$0xff]  ;;  %v247_v48 = vld [vmem:[#allocation7 + $0xd0] sm:$0xff] }
  0x35   :  { %162 = vmatprep.subr.mxu0 %v78_v15  ;;  %349 = vmatprep.subr.mxu1 %v250_v36  ;;  %v124_v47 = vld [vmem:[#allocation5 + $0x1f8] sm:$0xff]  ;;  %v123_v49 = vld [vmem:[#allocation5 + $0x1f0] sm:$0xff]  ;;  %v122_v51 = vld [vmem:[#allocation5 + $0x1e8] sm:$0xff] }
  0x36   :  { %163 = vmatpush1.msra.mxu0 %v77_v16  ;;  %350 = vmatpush3.msra.mxu1 %v234_v38  ;;  %v231_v50 = vld [vmem:[#allocation7 + $0x50] sm:$0xff]  ;;  %v246_v52 = vld [vmem:[#allocation7 + $0xc8] sm:$0xff]  ;;  %v121_v53 = vld [vmem:[#allocation5 + $0x1e0] sm:$0xff] }
  0x37   :  { %164 = vmatprep.subr.mxu0 %v76_v17  ;;  %351 = vmatprep.subr.mxu1 %v249_v40  ;;  %v230_v54 = vld [vmem:[#allocation7 + $0x48] sm:$0xff]  ;;  %v120_v55 = vld [vmem:[#allocation5 + $0x1d8] sm:$0xff]  ;;  %v245_v56 = vld [vmem:[#allocation7 + $0xc0] sm:$0xff] }
  0x38   :  { %165 = vmatpush1.msra.mxu0 %v75_v19  ;;  %352 = vmatpush3.msra.mxu1 %v233_v42  ;;  %v119_v57 = vld [vmem:[#allocation5 + $0x1d0] sm:$0xff]  ;;  %v229_v58 = vld [vmem:[#allocation7 + $0x40] sm:$0xff]  ;;  %v118_v59 = vld [vmem:[#allocation5 + $0x1c8] sm:$0xff] }
  0x39   :  { %166 = vmatprep.subr.mxu0 %v74_v20  ;;  %353 = vmatprep.subr.mxu1 %v248_v44  ;;  %v244_v60 = vld [vmem:[#allocation7 + $0xb8] sm:$0xff]  ;;  %v117_v61 = vld [vmem:[#allocation5 + $0x1c0] sm:$0xff]  ;;  %v243_v0 = vld [vmem:[#allocation7 + $0xb0] sm:$0xff] }
  0x3a   :  { %167 = vmatpush1.msra.mxu0 %v73_v21  ;;  %354 = vmatpush3.msra.mxu1 %v232_v46  ;;  %v228_v62 = vld [vmem:[#allocation7 + $0x38] sm:$0xff]  ;;  %v115_v1 = vld [vmem:[#allocation5 + $0x1b0] sm:$0xff]  ;;  %v114_v3 = vld [vmem:[#allocation5 + $0x1a8] sm:$0xff] }
  0x3b   :  { %168 = vmatprep.subr.mxu0 %v72_v22  ;;  %355 = vmatprep.subr.mxu1 %v247_v48  ;;  %v116_v63 = vld [vmem:[#allocation5 + $0x1b8] sm:$0xff]  ;;  %v227_v2 = vld [vmem:[#allocation7 + $0x30] sm:$0xff]  ;;  %v242_v4 = vld [vmem:[#allocation7 + $0xa8] sm:$0xff] }
  0x3c   :  { %169 = vmatpush1.msra.mxu0 %v71_v24  ;;  %356 = vmatpush3.msra.mxu1 %v231_v50  ;;  %v113_v5 = vld [vmem:[#allocation5 + $0x1a0] sm:$0xff]  ;;  %v226_v6 = vld [vmem:[#allocation7 + $0x28] sm:$0xff]  ;;  %v112_v7 = vld [vmem:[#allocation5 + $0x198] sm:$0xff] }
  0x3d   :  { %170 = vmatprep.subr.mxu0 %v70_v25  ;;  %357 = vmatprep.subr.mxu1 %v246_v52  ;;  %v241_v8 = vld [vmem:[#allocation7 + $0xa0] sm:$0xff]  ;;  %v111_v9 = vld [vmem:[#allocation5 + $0x190] sm:$0xff]  ;;  %v110_v11 = vld [vmem:[#allocation5 + $0x188] sm:$0xff] }
  0x3e   :  { %171 = vmatpush1.msra.mxu0 %v69_v26  ;;  %358 = vmatpush3.msra.mxu1 %v230_v54  ;;  %v225_v10 = vld [vmem:[#allocation7 + $0x20] sm:$0xff]  ;;  %v108_v13 = vld [vmem:[#allocation5 + $0x178] sm:$0xff]  ;;  %v107_v14 = vld [vmem:[#allocation5 + $0x170] sm:$0xff] }
  0x3f   :  { %172 = vmatprep.subr.mxu0 %v68_v29  ;;  %359 = vmatprep.subr.mxu1 %v245_v56  ;;  %v109_v12 = vld [vmem:[#allocation5 + $0x180] sm:$0xff]  ;;  %v106_v15 = vld [vmem:[#allocation5 + $0x168] sm:$0xff]  ;;  %v104_v17 = vld [vmem:[#allocation5 + $0x158] sm:$0xff] }
  0x40   :  { %173 = vmatpush1.msra.mxu0 %v67_v33  ;;  %360 = vmatpush3.msra.mxu1 %v229_v58  ;;  %v105_v16 = vld [vmem:[#allocation5 + $0x160] sm:$0xff]  ;;  %v103_v19 = vld [vmem:[#allocation5 + $0x150] sm:$0xff]  ;;  %v102_v20 = vld [vmem:[#allocation5 + $0x148] sm:$0xff]  ;;  %v130_v33 = vrot.slane %v526_v27, %v129_v28 }
  0x41   :  { %174 = vmatprep.subr.mxu0 %v66_v35  ;;  %361 = vmatprep.subr.mxu1 %v244_v60  ;;  %v101_v21 = vld [vmem:[#allocation5 + $0x140] sm:$0xff]  ;;  %v100_v22 = vld [vmem:[#allocation5 + $0x138] sm:$0xff]  ;;  %v99_v24 = vld [vmem:[#allocation5 + $0x130] sm:$0xff] }
  0x42   :  { %175 = vmatpush1.msra.mxu0 %v65_v37  ;;  %362 = vmatpush3.msra.mxu1 %v228_v62  ;;  %v98_v25 = vld [vmem:[#allocation5 + $0x128] sm:$0xff]  ;;  %v97_v26 = vld [vmem:[#allocation5 + $0x120] sm:$0xff]  ;;  %v96_v29 = vld [vmem:[#allocation5 + $0x118] sm:$0xff] }
  0x43   :  { %176 = vmatprep.subr.mxu0 %v64_v39  ;;  %363 = vmatprep.subr.mxu1 %v243_v0  ;;  %v95_v30 = vld [vmem:[#allocation5 + $0x110] sm:$0xff]  ;;  %v94_v31 = vld [vmem:[#allocation5 + $0x108] sm:$0xff]  ;;  %v93_v32 = vld [vmem:[#allocation5 + $0x100] sm:$0xff] }
  0x44   :  { %177 = vmatpush1.msra.mxu0 %v63_v41  ;;  %364 = vmatpush3.msra.mxu1 %v227_v2  ;;  %v240_v34 = vld [vmem:[#allocation7 + $0x98] sm:$0xff]  ;;  %v239_v36 = vld [vmem:[#allocation7 + $0x90] sm:$0xff]  ;;  %v238_v38 = vld [vmem:[#allocation7 + $0x88] sm:$0xff] }
  0x45   :  { %178 = vmatprep.subr.mxu0 %v62_v43  ;;  %365 = vmatprep.subr.mxu1 %v242_v4  ;;  %v224_v35 = vld [vmem:[#allocation7 + $0x18] sm:$0xff]  ;;  %v223_v37 = vld [vmem:[#allocation7 + $0x10] sm:$0xff]  ;;  %v222_v39 = vld [vmem:[#allocation7 + $0x8] sm:$0xff] }
  0x46   :  { %179 = vmatpush1.msra.mxu0 %v61_v45  ;;  %366 = vmatpush3.msra.mxu1 %v226_v6  ;;  %v237_v40 = vld [vmem:[#allocation7 + $0x80] sm:$0xff]  ;;  %v125_v27 = vld [vmem:[%s546_s2] sm:$0x3]  ;;  %s483_s2 = smov [#allocation8]  }
  0x47   :  { %180 = vmatprep.subr.mxu0 %v124_v47  ;;  %367 = vmatprep.subr.mxu1 %v241_v8  ;;  %v221_v41 = vld [vmem:[#allocation7] sm:$0xff]  ;;  %v141_v42 = vrot.slane %v125_v27, %v129_v28  ;;  %v145_v43 = vrot.slane %v125_v27, %v133_v23  ;;  %s335_s13 = sshll.u32 %s483_s2, 4  ;;  %s336_s13 = int_to_ptr.vmem [resolvable:$true] %s335_s13 }
  0x48   :  { %181 = vmatpush2.msra.mxu0 %v123_v49  ;;  %368 = vmatpush3.msra.mxu1 %v225_v10  ;;  %s450_s14 = scalar_lea.vmem %s336_s13, 16  ;;  %s454_s15 = scalar_lea.vmem %s336_s13, 32 }
  0x49   :  { %182 = vmatprep.subr.mxu0 %v122_v51  ;;  %369 = vmatprep.subr.mxu1 %v240_v34  ;;  %v253_v51 = vld [vmem:[%s548_s4] sm:$0x1]  ;;  %p451_p1 = scmp.ne.s32.totalorder %s336_s13, %s450_s14  ;;  %p455_p2 = scmp.lt.s32.totalorder %s336_s13, %s336_s13 }
  0x4a   :  { %183 = vmatpush2.msra.mxu0 %v121_v53  ;;  %370 = vmatpush3.msra.mxu1 %v224_v35  ;;  %p456_p3 = scmp.lt.s32.totalorder %s454_s15, %s450_s14 }
  0x4b   :  { %184 = vmatprep.subr.mxu0 %v120_v55  ;;  %371 = vmatprep.subr.mxu1 %v239_v36 }
  0x4c   :  { %185 = vmatpush2.msra.mxu0 %v119_v57  ;;  %372 = vmatpush3.msra.mxu1 %v223_v37  ;;  %p457_p4 = por %p456_p3, %p455_p2 }
  0x4d   :  { %186 = vmatprep.subr.mxu0 %v118_v59  ;;  %373 = vmatprep.subr.mxu1 %v238_v38 }
  0x4e   :  { %187 = vmatpush2.msra.mxu0 %v117_v61  ;;  %374 = vmatpush3.msra.mxu1 %v222_v39  ;;  %p458_p5 = pnand %p457_p4, %p451_p1 }
  0x4f   :  { %188 = vmatprep.subr.mxu0 %v116_v63  ;;  %375 = vmatprep.subr.mxu1 %v237_v40 }
  0x50   :  { %189 = vmatpush2.msra.mxu0 %v115_v1  ;;  %376 = vmatpush3.msra.mxu1 %v221_v41 }
  0x51   :  { %190 = vmatprep.subr.mxu0 %v114_v3 }
  0x52   :  { %191 = vmatpush2.msra.mxu0 %v113_v5 }
  0x53   :  { %192 = vmatprep.subr.mxu0 %v112_v7 }
  0x54   :  { %193 = vmatpush2.msra.mxu0 %v111_v9 }
  0x55   :  { %194 = vmatprep.subr.mxu0 %v110_v11 }
  0x56   :  { %195 = vmatpush2.msra.mxu0 %v109_v12 }
  0x57   :  { %196 = vmatprep.subr.mxu0 %v108_v13 }
  0x58   :  { %197 = vmatpush2.msra.mxu0 %v107_v14 }
  0x59   :  { %198 = vmatprep.subr.mxu0 %v106_v15 }
  0x5a   :  { %199 = vmatpush2.msra.mxu0 %v105_v16 }
  0x5b   :  { %200 = vmatprep.subr.mxu0 %v104_v17 }
  0x5c   :  { %201 = vmatpush2.msra.mxu0 %v103_v19 }
  0x5d   :  { %202 = vmatprep.subr.mxu0 %v102_v20 }
  0x5e   :  { %203 = vmatpush2.msra.mxu0 %v101_v21 }
  0x5f   :  { %204 = vmatprep.subr.mxu0 %v100_v22 }
  0x60   :  { %205 = vmatpush2.msra.mxu0 %v99_v24 }
  0x61   :  { %206 = vmatprep.subr.mxu0 %v98_v25 }
  0x62   :  { %207 = vmatpush2.msra.mxu0 %v97_v26 }
  0x63   :  { %208 = vmatprep.subr.mxu0 %v96_v29 }
  0x64   :  { %209 = vmatpush2.msra.mxu0 %v95_v30 }
  0x65   :  { %210 = vmatprep.subr.mxu0 %v94_v31 }
  0x66   :  { %211 = vmatpush2.msra.mxu0 %v93_v32 }
  0x67   :  { %213 = vmatmul.mubr.f32.vlgmr.msra.gmra.mxu0 %v130_v33 }
 0x127   :  { %v214_v44 = vpop.f32.mrf.mxu0 }
 0x128   :  { %v215_v45 = vadd.f32 %v214_v44, %v141_v42 }
 0x129   :  { %v216_v46 = vpop.f32.mrf.mxu0 }
 0x12a   :  { %v217_v47 = vadd.f32 %v216_v46, %v145_v43  ;;  %v219_v49 = vmax.f32 %v215_v45, 0.0 }
 0x12c   :  { %v220_v48 = vmax.f32 %v217_v47, 0.0 }
 0x12e   :  { %318 = vmatprep.mubr.f32.mxu1 %v220_v48 }
 0x12f   :  { %319 = vmatmul.mubr.f32.vlgmr.msra.gmra.mxu1 %v219_v49 }
 0x1ef   :  { %v377_v50 = vpop.f32.mrf.mxu1 }
 0x1f1   :  { %v378_v52 = vpop.f32.mrf.mxu1 }
 0x1f2   :  { %v379_v53 = vadd.f32 %v378_v52, %v377_v50 }
 0x1f4   :  { %v321_v54 = vadd.f32 %v379_v53, %v253_v51 }
 0x1f6   :  { %v324_v55 = vmul.f32 0.5, %v321_v54 }
 0x1f8   :  { %388 = vtanh.f32 %v324_v55 }
 0x205   :  { %v389_v18 = vpop.eup %388 }
 0x206   :  { %v326_v23 = vadd.f32 1.0, %v389_v18 }
 0x208   :  { %v327_v56 = vmul.f32 0.5, %v326_v23 }
 0x20a   :  { %328 = vst [vmem:[#allocation8] sm:$0x1] %v327_v56 }
 0x20b   :  { %461 = shalt.err (!%p458_p5)
}
 0x20c   :  { %338 = dma.vmem_to_hbm [thread:$0]  %s336_s13, 16, %s549_s5, [#allocation4]  }
 0x20d   :  { %474 = dma.done.wait [#allocation4], 16  }
 0x20e   :  { %475 = vsyncadd [#allocation4], 4294967280 }
 0x20f   :  { %342 = vsyncpa [#allocation3], 1 }
 0x210   :  { %343 = vsyncpa [#allocation6], 1 }
 0x211   :  { %344 = vsyncpa [#allocation4], 1 }

</bundles_post_ra>
